<compile_context>
chip_gen: v7x
topology: tpu7x:2x2x1
jax: 0.10.0
libtpu: 0.0.40
codegen_flags: <defaults>
</compile_context>

<pallas_src>
import functools

import jax
import jax.numpy as jnp
from jax.experimental import pallas as pl
from jax.experimental.pallas import tpu as pltpu

_LANES = 128
_VMEM_BUDGET = 24 << 20      # budget for double-buffered tiles
_VMEM_CAP = 32 << 20         # hard cap on the scoped VMEM limit (v7x-safe)
_TINY_ROWS = 64              # below this, plain jnp is strictly faster


def _round_up(x, m):
    return ((x + m - 1) // m) * m


def _sublane_multiple(dtype):
    # Native packed-vreg sublane multiple: 8 for 4-byte, 16 for 2-byte, 32 for 1-byte.
    return max(8, 32 // jnp.dtype(dtype).itemsize)


def _default_row_tile():
    try:
        kind = jax.devices()[0].device_kind.lower()
    except Exception:  # pragma: no cover - device query best-effort only
        kind = ""
    return 2048 if "v7" in kind else 1024


def _compute_dtype_for(dtype):
    if dtype in (jnp.bfloat16, jnp.float16):
        return dtype
    return jnp.float32


def _make_cross_stitch_kernel(n, compute_dtype):
    """Kernel over N per-feature VMEM tiles: out = sum_i a[i] * x_i."""

    def kernel(a_ref, *refs):
        # a_ref : SMEM (N,) float32 scalar-prefetch weights
        # refs  : N input tiles (rt, 128) followed by the output tile
        x_refs = refs[:n]
        o_ref = refs[n]
        acc = x_refs[0][...].astype(compute_dtype) * a_ref[0].astype(compute_dtype)
        for i in range(1, n):  # N is static & small; unrolled VPU FMAs
            acc = acc + x_refs[i][...].astype(compute_dtype) * a_ref[i].astype(
                compute_dtype
            )
        o_ref[...] = acc.astype(o_ref.dtype)

    return kernel


@functools.partial(jax.jit, static_argnames=("row_tile", "force_kernel"))
def _cross_stitch_impl(features, a, *, row_tile, force_kernel):
    n = len(features)
    shape = features[0].shape
    dtype = features[0].dtype

    # Correctness guards (all static).
    for f in features:
        assert f.shape == shape, "all features must share the same shape"
        assert f.dtype == dtype, "all features must share the same dtype"
    assert a.shape[0] == n, "len(a) must equal the number of features"

    itemsize = jnp.dtype(dtype).itemsize
    total = 1
    for d in shape:
        total *= d
    assert total > 0

    sub = _sublane_multiple(dtype)
    min_unit = sub * _LANES

    # Tiny-input bypass: the kernel would be 100% fixed overhead here.
    if (not force_kernel) and total < _TINY_ROWS * _LANES:
        a_c = a.astype(jnp.float32)
        out = a_c[0] * features[0].astype(jnp.float32)
        for i in range(1, n):
            out = out + a_c[i] * features[i].astype(jnp.float32)
        return out.astype(dtype)

    # Minimal padding: only up to one minimal (sub, 128) tile; zero when the
    # element count is already aligned.
    pad = (-total) % min_unit
    rows = (total + pad) // _LANES

    # Row tile: big (roofline) but (a) >= ~8 grid steps for pipeline steady
    # state / megacore balance, (b) dtype-native sublane multiple, (c) fits
    # the double-buffered VMEM budget.
    rt = _round_up(max(row_tile, sub), sub)
    step_cap = _round_up(pl.cdiv(rows, 8), sub)
    rt = min(rt, step_cap)
    max_rt_vmem = max(sub, (_VMEM_BUDGET // (2 * (n + 1) * _LANES * itemsize)) // sub * sub)
    rt = max(sub, min(rt, max_rt_vmem))

    grid = pl.cdiv(rows, rt)  # ragged last block handled by Pallas

    flats = []
    for f in features:
        flat = f.reshape(-1)
        if pad:
            flat = jnp.pad(flat, (0, pad))
        flats.append(flat.reshape(rows, _LANES))

    # Double-buffered VMEM footprint: N inputs + 1 output, 2 buffers each.
    vmem_need = 2 * (n + 1) * rt * _LANES * itemsize
    vmem_limit = int(min(max(vmem_need + (4 << 20), 16 << 20), _VMEM_CAP))

    compute_dtype = _compute_dtype_for(dtype)
    kernel = _make_cross_stitch_kernel(n, compute_dtype)

    cost = pl.CostEstimate(
        flops=2 * n * total,
        transcendentals=0,
        bytes_accessed=(n + 1) * total * itemsize,
    )

    out_flat = pl.pallas_call(
        kernel,
        out_shape=jax.ShapeDtypeStruct((rows, _LANES), dtype),
        grid_spec=pltpu.PrefetchScalarGridSpec(
            num_scalar_prefetch=1,
            grid=(grid,),
            in_specs=[
                pl.BlockSpec((rt, _LANES), lambda i, a_sc: (i, 0))
                for _ in range(n)
            ],
            out_specs=pl.BlockSpec((rt, _LANES), lambda i, a_sc: (i, 0)),
        ),
        compiler_params=pltpu.CompilerParams(
            dimension_semantics=("parallel",),
            vmem_limit_bytes=vmem_limit,
        ),
        cost_estimate=cost,
    )(a.astype(jnp.float32), *flats)

    if pad:
        return out_flat.reshape(-1)[:total].reshape(shape)
    return out_flat.reshape(shape)


def cross_stitch(features, a, *, row_tile=None, force_kernel=False):
    """out = sum_i a[i] * features[i]  (forward of SingleSidedAsymmetricCrossStitch)."""
    if row_tile is None:
        row_tile = _default_row_tile()
    return _cross_stitch_impl(
        tuple(features), a, row_tile=int(row_tile), force_kernel=bool(force_kernel)
    )


def make_cross_stitch_weights(init_weights, in_channels, out_channels):
    """Deterministic reproduction of the module's __init__ parameter."""
    assert in_channels >= out_channels
    assert in_channels % out_channels == 0
    multiplier = in_channels // out_channels - 1
    a = [float(init_weights[0])] + [
        float(init_weights[1]) / float(multiplier) for _ in range(multiplier)
    ]
    return jnp.asarray(a, dtype=jnp.float32)


if __name__ == "__main__":
    # Small, module-consistent shapes.
    in_channels, out_channels = 8, 4          # -> N = 2 feature maps, a has len 2
    B, C, H, W = 2, out_channels, 16, 16      # each feature is (B, C, H, W), NCHW
    init_weights = (0.9, 0.1)                 # stands in for cfg.MODEL.INIT

    a = make_cross_stitch_weights(init_weights, in_channels, out_channels)
    n_feats = a.shape[0]

    key = jax.random.PRNGKey(0)
    keys = jax.random.split(key, n_feats)
    features = tuple(
        jax.random.normal(k, (B, C, H, W), dtype=jnp.float32) for k in keys
    )

    ref = sum(a[i] * features[i] for i in range(n_feats))

    # 1) Exercise the actual Pallas kernel at the small demo shape.
    out = cross_stitch(features, a, force_kernel=True)
    out = jax.block_until_ready(out)
    assert out.shape == (B, C, H, W)
    assert jnp.allclose(out, ref, atol=1e-5, rtol=1e-5)

    # 2) Auto path (tiny-input bypass) must agree as well.
    out_auto = jax.block_until_ready(cross_stitch(features, a))
    assert jnp.allclose(out_auto, ref, atol=1e-5, rtol=1e-5)

    print("KERNEL_OK")
</pallas_src>

<mosaic_0001>
module attributes {stable_mosaic.version = 11 : i64} {
  func.func @kernel(%arg0: i32, %arg1: memref<2xf32, #tpu.memory_space<smem>>, %arg2: memref<8x128xf32, #tpu.memory_space<vmem>>, %arg3: memref<8x128xf32, #tpu.memory_space<vmem>>, %arg4: memref<8x128xf32, #tpu.memory_space<vmem>>) attributes {dimension_semantics = [#tpu.dimension_semantics<parallel>], iteration_bounds = array<i64: 2>, scalar_prefetch = 1 : i64, scratch_operands = 0 : i64, tpu.core_type = #tpu.core_type<tc>, window_params = [{transform_indices = @transform_0, window_bounds = array<i64: 8, 128>}, {transform_indices = @transform_1, window_bounds = array<i64: 8, 128>}, {transform_indices = @transform_2, window_bounds = array<i64: 8, 128>}]} {
    %c0 = arith.constant 0 : index
    %c0_0 = arith.constant 0 : index
    %0 = vector.load %arg2[%c0, %c0_0] : memref<8x128xf32, #tpu.memory_space<vmem>>, vector<8x128xf32>
    %c0_1 = arith.constant 0 : index
    %1 = memref.load %arg1[%c0_1] : memref<2xf32, #tpu.memory_space<smem>>
    %2 = vector.broadcast %1 : f32 to vector<8x128xf32>
    %3 = arith.mulf %0, %2 : vector<8x128xf32>
    %c0_2 = arith.constant 0 : index
    %c0_3 = arith.constant 0 : index
    %4 = vector.load %arg3[%c0_2, %c0_3] : memref<8x128xf32, #tpu.memory_space<vmem>>, vector<8x128xf32>
    %c1 = arith.constant 1 : index
    %5 = memref.load %arg1[%c1] : memref<2xf32, #tpu.memory_space<smem>>
    %6 = vector.broadcast %5 : f32 to vector<8x128xf32>
    %7 = arith.mulf %4, %6 : vector<8x128xf32>
    %8 = arith.addf %3, %7 : vector<8x128xf32>
    %c0_4 = arith.constant 0 : index
    %c0_5 = arith.constant 0 : index
    %9 = vector.load %arg4[%c0_4, %c0_5] : memref<8x128xf32, #tpu.memory_space<vmem>>, vector<8x128xf32>
    tpu.vector_store %arg4[%c0_4, %c0_5], %8 {strides = array<i32>} : memref<8x128xf32, #tpu.memory_space<vmem>>, vector<8x128xf32>,
    return
  }
  func.func @transform_0(%arg0: i32, %arg1: memref<2xf32, #tpu.memory_space<smem>>) -> (i32, i32) {
    %c0_i32 = arith.constant 0 : i32
    %c0_i32_0 = arith.constant 0 : i32
    return %arg0, %c0_i32 : i32, i32
  }
  func.func @transform_1(%arg0: i32, %arg1: memref<2xf32, #tpu.memory_space<smem>>) -> (i32, i32) {
    %c0_i32 = arith.constant 0 : i32
    %c0_i32_0 = arith.constant 0 : i32
    return %arg0, %c0_i32 : i32, i32
  }
  func.func @transform_2(%arg0: i32, %arg1: memref<2xf32, #tpu.memory_space<smem>>) -> (i32, i32) {
    %c0_i32 = arith.constant 0 : i32
    %c0_i32_0 = arith.constant 0 : i32
    return %arg0, %c0_i32 : i32, i32
  }
}

</mosaic_0001>

<bundles_post_ra>
// kernel: _cross_stitch_impl.1
= control target key start
LH: loop header
LB: loop body
LE: loop exit
PB: predicated region body
PF: predicated region fallthrough
CT: control target
= control target key end

     0   :  { %s313_s0 = inlined_call_operand.vmem [shape: f32[2], index: 0, kind: input, shape index: {}]   ;;  %s314_s1 = inlined_call_operand.vmem [shape: f32[16,128], index: 1, kind: input, shape index: {}]   ;;  %s315_s2 = inlined_call_operand.vmem [shape: f32[16,128], index: 2, kind: input, shape index: {}]   ;;  %s316_s3 = inlined_call_operand.vmem [shape: f32[16,128], index: 3, kind: output, shape index: {}]  }
   0x1   :  { %s8_s14 = sshll.u32 %s313_s0, 4  ;;  %s9_s14 = int_to_ptr.vmem [resolvable:$true] %s8_s14 }
   0x2   :  { %s258_s15 = scalar_lea.vmem %s9_s14, 16  ;;  %p263_p1 = scmp.lt.s32.totalorder %s9_s14, %s9_s14 }
   0x3   :  { %p259_p0 = scmp.ne.s32.totalorder %s9_s14, %s258_s15  ;;  %p264_p2 = scmp.lt.s32.totalorder %s258_s15, %s258_s15 }
   0x5   :  { %p265_p3 = por %p264_p2, %p263_p1 }
   0x7   :  { %p266_p4 = pnand %p265_p3, %p259_p0 }
   0x9   :  { %269 = shalt.err (!%p266_p4)  }
   0xa   :  { %s280_s16 = smov [#allocation3]  }
   0xb   :  { %11 = dma.vmem_to_smem %s9_s14, 16, %s280_s16, [#allocation2] }
   0xc   :  { %274 = dma.done.wait [#allocation2], 16 }
   0xd   :  { %275 = vsyncadd [#allocation2], 4294967280 }
   0xe   :  { %13 = sfence }
   0xf   :  { %s276_s17 = smov 0  }
  0x10 LB: > { %s238_s18 = sadd.s32 4294967295, %s278_s17   ;;  %p242_p5 = scmp.ge.s32.totalorder %s278_s17, 1  ;;  %s278_s17 = sphi %s276_s17, %s19_s17  }
  0x11   : > { %p127_p6 = scmp.lt.s32.totalorder %s278_s17, 3 }
  0x13   : > { %p128_p7 = pnand %p242_p5, %p127_p6 }
  0x14   : > { %p151_p8 = scmp.lt.s32.totalorder (!%p128_p7), %s238_s18, 1  ;;  %s164_s0 = sld [smem:[#allocation3]] (!%p128_p7) }
  0x15   : > { %131 = sbr.rel (%p128_p7) target bundleno = 38 (0x26), region = 28  ;;  %s246_s19 = sld [smem:[#allocation3 + $0x1]] (!%p128_p7) }
  0x1a   : > { %v165_v1 = vstv (!%p128_p7), %s164_s0 }
  0x1b   : > { %v169_v4 = vstv (!%p128_p7), %s246_s19 }
  0x1c   : > { %s318_s18 = smov (!%p151_p8, %s238_s18), 1 }
  0x1d   : > { %s243_s20 = sshll.u32 %s318_s18, 3 }
  0x1e   : > { %s154_s23 = scalar_lea.vmem %s314_s1, %s243_s20  ;;  %s158_s26 = scalar_lea.vmem %s315_s2, %s243_s20 }
  0x1f   : > { %v163_v0 = vld [vmem:[%s154_s23] sm:$0xff]  ;;  %s162_s29 = scalar_lea.vmem %s316_s3, %s243_s20 }
  0x20   : > { %v167_v2 = vld [vmem:[%s158_s26] sm:$0xff]  ;;  %v166_v3 = vmul.f32 %v165_v1, %v163_v0 }
  0x21   : > { %v170_v5 = vmul.f32 %v169_v4, %v167_v2 }
  0x23   : > { %v171_v6 = vadd.f32 %v170_v5, %v166_v3 }
  0x25   : > { %172 = vst [vmem:[%s162_s29] sm:$0xff] %v171_v6 }
  0x26 PF: > { %s19_s17 = sadd.s32 1, %s278_s17  }
  0x27   : > { %p16_p9 = scmp.ge.s32.totalorder %s19_s17, 4  }
  0x29   :  { %18 = sbr.rel (!%p16_p9) target bundleno = 16 (0x10), region = 61 }

</bundles_post_ra>
